<compile_context>
chip_gen: v7x
topology: tpu7x:2x2x1
jax: 0.10.0
libtpu: 0.0.40
codegen_flags: <defaults>
</compile_context>

<pallas_src>
import functools
import math

import jax
import jax.numpy as jnp
from jax import lax
from jax.experimental import pallas as pl
from jax.experimental.pallas import tpu as pltpu

_NEG_INF = -1e30  # finite "minus infinity" -> no NaNs in the online-softmax rescale


# --------------------------------------------------------------------------
# helpers
# --------------------------------------------------------------------------
def _pick_block(total, target, multiple):
    """Largest block <= target that divides `total` and is a multiple of
    `multiple`; falls back to the full extent (always legal per BlockSpec rules)."""
    if total <= target:
        return total
    b = (target // multiple) * multiple
    while b >= multiple:
        if total % b == 0:
            return b
        b -= multiple
    return total


# --------------------------------------------------------------------------
# Linear projection: y = x @ W.T + b     (PyTorch nn.Linear semantics)
# --------------------------------------------------------------------------
def _linear_kernel(x_ref, wt_ref, b_ref, o_ref):
    # x: (tm, K), wt: (K, N), b: (1, N)  -> o: (tm, N)
    acc = jnp.dot(x_ref[...], wt_ref[...], preferred_element_type=jnp.float32)
    o_ref[...] = (acc + b_ref[...].astype(jnp.float32)).astype(o_ref.dtype)


def linear_pallas(x, w, b, *, block_rows=None):
    """x: (M, K); w: (N, K) (PyTorch layout, out x in); b: (N,)."""
    M, K = x.shape
    N = w.shape[0]
    if block_rows is None:
        block_rows = _pick_block(M, 512, 8)   # row-tile for pipelining on long seqs
    grid = (pl.cdiv(M, block_rows),)
    wt = w.T  # transpose once in the wrapper so the kernel is a plain MXU matmul
    return pl.pallas_call(
        _linear_kernel,
        out_shape=jax.ShapeDtypeStruct((M, N), x.dtype),
        grid=grid,
        in_specs=[
            pl.BlockSpec((block_rows, K), lambda i: (i, 0)),   # activations (tiled)
            pl.BlockSpec((K, N), lambda i: (0, 0)),            # weights (resident)
            pl.BlockSpec((1, N), lambda i: (0, 0)),            # bias row
        ],
        out_specs=pl.BlockSpec((block_rows, N), lambda i: (i, 0)),
        compiler_params=pltpu.CompilerParams(dimension_semantics=("parallel",)),
    )(x, wt, b.reshape(1, N))


# --------------------------------------------------------------------------
# Flash-style multi-head attention: (H, Sq, d_k) x (H, Sk, d_k) -> (H, Sq, d_k)
# --------------------------------------------------------------------------
def _mha_kernel(q_ref, k_ref, v_ref, o_ref, m_sc, l_sc, acc_sc, *,
                scale, causal, block_q, block_k):
    kv = pl.program_id(2)

    @pl.when(kv == 0)
    def _():
        m_sc[...] = jnp.full_like(m_sc, _NEG_INF)
        l_sc[...] = jnp.zeros_like(l_sc)
        acc_sc[...] = jnp.zeros_like(acc_sc)

    q = q_ref[...].astype(jnp.float32) * scale                 # (1, tq, d_k)
    k = k_ref[...].astype(jnp.float32)                          # (1, tk, d_k)
    s = jnp.einsum("bqd,bkd->bqk", q, k,
                   preferred_element_type=jnp.float32)          # (1, tq, tk) on MXU

    if causal:
        q_idx = pl.program_id(1) * block_q + lax.broadcasted_iota(jnp.int32, s.shape, 1)
        k_idx = kv * block_k + lax.broadcasted_iota(jnp.int32, s.shape, 2)
        future = k_idx > q_idx
        s = jnp.where(future, _NEG_INF, s)

    m_prev = m_sc[...]
    m_new = jnp.maximum(m_prev, s.max(-1, keepdims=True))       # (1, tq, 1)
    alpha = jnp.exp(m_prev - m_new)
    p = jnp.exp(s - m_new)
    if causal:
        p = jnp.where(future, 0.0, p)                            # exact zeros for masked keys
    l_sc[...] = alpha * l_sc[...] + p.sum(-1, keepdims=True)
    acc_sc[...] = alpha * acc_sc[...] + jnp.einsum(
        "bqk,bkd->bqd", p, v_ref[...].astype(jnp.float32),
        preferred_element_type=jnp.float32)
    m_sc[...] = m_new

    @pl.when(kv == pl.num_programs(2) - 1)
    def _():
        o_ref[...] = (acc_sc[...] / l_sc[...]).astype(o_ref.dtype)


def flash_mha(q, k, v, *, causal=False, block_q=None, block_k=None):
    """q: (H, Sq, d_k); k, v: (H, Sk, d_k)."""
    H, sq, d_k = q.shape
    sk = k.shape[1]
    if block_q is None:
        block_q = _pick_block(sq, 512, 8)
    if block_k is None:
        block_k = _pick_block(sk, 512, 8)
    scale = 1.0 / math.sqrt(d_k)
    grid = (H, pl.cdiv(sq, block_q), pl.cdiv(sk, block_k))

    kernel = functools.partial(_mha_kernel, scale=scale, causal=causal,
                               block_q=block_q, block_k=block_k)
    return pl.pallas_call(
        kernel,
        out_shape=jax.ShapeDtypeStruct((H, sq, d_k), q.dtype),
        grid_spec=pltpu.PrefetchScalarGridSpec(
            num_scalar_prefetch=0,
            grid=grid,
            in_specs=[
                pl.BlockSpec((1, block_q, d_k), lambda h, qi, ki: (h, qi, 0)),
                pl.BlockSpec((1, block_k, d_k), lambda h, qi, ki: (h, ki, 0)),
                pl.BlockSpec((1, block_k, d_k), lambda h, qi, ki: (h, ki, 0)),
            ],
            out_specs=pl.BlockSpec((1, block_q, d_k), lambda h, qi, ki: (h, qi, 0)),
            scratch_shapes=[
                pltpu.VMEM((1, block_q, 1), jnp.float32),    # running max
                pltpu.VMEM((1, block_q, 1), jnp.float32),    # running denominator
                pltpu.VMEM((1, block_q, d_k), jnp.float32),  # output accumulator
            ],
        ),
        compiler_params=pltpu.CompilerParams(
            dimension_semantics=("parallel", "parallel", "arbitrary")),
    )(q, k, v)


# --------------------------------------------------------------------------
# Full MultiHeadAttention forward
# --------------------------------------------------------------------------
def multi_head_attention(q, k, v, params, *, heads, mask_future_positions=False):
    sq, d_model = q.shape
    sk = k.shape[0]
    assert d_model % heads == 0
    d_k = d_model // heads

    # Q/K/V projections (Pallas MXU matmul + bias)
    qp = linear_pallas(q, params["W_q"], params["b_q"])
    kp = linear_pallas(k, params["W_k"], params["b_k"])
    vp = linear_pallas(v, params["W_v"], params["b_v"])

    # split heads: (S, d_model) -> (heads, S, d_k)   (cheap layout plumbing in XLA)
    qh = qp.reshape(sq, heads, d_k).transpose(1, 0, 2)
    kh = kp.reshape(sk, heads, d_k).transpose(1, 0, 2)
    vh = vp.reshape(sk, heads, d_k).transpose(1, 0, 2)

    # TODO(synk): optional runtime padding `mask` argument and training-mode
    # dropout on the attention probabilities are not implemented here
    # (mask=None, eval-mode dropout == identity).
    ctx = flash_mha(qh, kh, vh, causal=mask_future_positions)    # (heads, sq, d_k)

    concat = ctx.transpose(1, 0, 2).reshape(sq, d_model)
    return linear_pallas(concat, params["W_o"], params["b_o"])


# --------------------------------------------------------------------------
# Pure-JAX reference (mirrors the PyTorch module exactly, eval mode)
# --------------------------------------------------------------------------
def _reference(q, k, v, params, *, heads, mask_future_positions=False):
    d_model = q.shape[-1]
    d_k = d_model // heads

    def lin(x, w, b):
        return x @ w.T + b

    qp = lin(q, params["W_q"], params["b_q"]).reshape(-1, heads, d_k).transpose(1, 0, 2)
    kp = lin(k, params["W_k"], params["b_k"]).reshape(-1, heads, d_k).transpose(1, 0, 2)
    vp = lin(v, params["W_v"], params["b_v"]).reshape(-1, heads, d_k).transpose(1, 0, 2)
    scores = jnp.einsum("hqd,hkd->hqk", qp, kp) / math.sqrt(d_k)
    if mask_future_positions:
        future = jnp.triu(jnp.ones(scores.shape[-2:], dtype=bool), k=1)
        scores = jnp.where(future, -jnp.inf, scores)
    probs = jax.nn.softmax(scores, axis=-1)
    ctx = jnp.einsum("hqk,hkd->hqd", probs, vp)
    concat = ctx.transpose(1, 0, 2).reshape(-1, d_model)
    return lin(concat, params["W_o"], params["b_o"])


if __name__ == "__main__":
    key = jax.random.PRNGKey(0)
    ks = jax.random.split(key, 11)

    seq_len, d_model, heads = 8, 32, 4
    scale_w = 1.0 / math.sqrt(d_model)

    q = jax.random.normal(ks[0], (seq_len, d_model), dtype=jnp.float32)
    k = jax.random.normal(ks[1], (seq_len, d_model), dtype=jnp.float32)
    v = jax.random.normal(ks[2], (seq_len, d_model), dtype=jnp.float32)

    params = {
        "W_q": jax.random.normal(ks[3], (d_model, d_model), jnp.float32) * scale_w,
        "b_q": jax.random.normal(ks[4], (d_model,), jnp.float32) * 0.1,
        "W_k": jax.random.normal(ks[5], (d_model, d_model), jnp.float32) * scale_w,
        "b_k": jax.random.normal(ks[6], (d_model,), jnp.float32) * 0.1,
        "W_v": jax.random.normal(ks[7], (d_model, d_model), jnp.float32) * scale_w,
        "b_v": jax.random.normal(ks[8], (d_model,), jnp.float32) * 0.1,
        "W_o": jax.random.normal(ks[9], (d_model, d_model), jnp.float32) * scale_w,
        "b_o": jax.random.normal(ks[10], (d_model,), jnp.float32) * 0.1,
    }

    # default module configuration (mask_future_positions=False, mask=None)
    out = multi_head_attention(q, k, v, params, heads=heads,
                               mask_future_positions=False)
    out = jax.block_until_ready(out)
    ref = _reference(q, k, v, params, heads=heads, mask_future_positions=False)
    assert out.shape == (seq_len, d_model)
    assert jnp.allclose(out, ref, atol=1e-4, rtol=1e-4), "mismatch (no causal mask)"

    # causal variant (mask_future_positions=True)
    out_c = multi_head_attention(q, k, v, params, heads=heads,
                                 mask_future_positions=True)
    out_c = jax.block_until_ready(out_c)
    ref_c = _reference(q, k, v, params, heads=heads, mask_future_positions=True)
    assert jnp.allclose(out_c, ref_c, atol=1e-4, rtol=1e-4), "mismatch (causal mask)"

    print("KERNEL_OK")
</pallas_src>

<mosaic_0001>
module attributes {stable_mosaic.version = 11 : i64} {
  func.func @_linear_kernel(%arg0: i32, %arg1: memref<8x32xf32, #tpu.memory_space<vmem>>, %arg2: memref<32x32xf32, #tpu.memory_space<vmem>>, %arg3: memref<1x32xf32, #tpu.memory_space<vmem>>, %arg4: memref<8x32xf32, #tpu.memory_space<vmem>>) attributes {dimension_semantics = [#tpu.dimension_semantics<parallel>], iteration_bounds = array<i64: 1>, scalar_prefetch = 0 : i64, scratch_operands = 0 : i64, tpu.core_type = #tpu.core_type<tc>, window_params = [{transform_indices = @transform_0, window_bounds = array<i64: 8, 32>}, {pipeline_mode = #tpu.pipeline_mode<synchronous>, transform_indices = @transform_1, window_bounds = array<i64: 32, 32>}, {pipeline_mode = #tpu.pipeline_mode<synchronous>, transform_indices = @transform_2, window_bounds = array<i64: 1, 32>}, {transform_indices = @transform_3, window_bounds = array<i64: 8, 32>}]} {
    %c0 = arith.constant 0 : index
    %c0_0 = arith.constant 0 : index
    %0 = vector.load %arg1[%c0, %c0_0] : memref<8x32xf32, #tpu.memory_space<vmem>>, vector<8x32xf32>
    %c0_1 = arith.constant 0 : index
    %c0_2 = arith.constant 0 : index
    %1 = vector.load %arg2[%c0_1, %c0_2] : memref<32x32xf32, #tpu.memory_space<vmem>>, vector<32x32xf32>
    %cst = arith.constant dense<0.000000e+00> : vector<8x32xf32>
    %2 = tpu.matmul %0, %1, %cst {dimension_numbers = #tpu.dot_dimension_numbers<[1], [0], [0], [1], [0, 0, 1, 1], [], []>} : vector<8x32xf32>, vector<32x32xf32>, vector<8x32xf32> -> vector<8x32xf32>
    %c0_3 = arith.constant 0 : index
    %c0_4 = arith.constant 0 : index
    %3 = vector.load %arg3[%c0_3, %c0_4] : memref<1x32xf32, #tpu.memory_space<vmem>>, vector<1x32xf32>
    %4 = vector.broadcast %3 : vector<1x32xf32> to vector<8x32xf32>
    %5 = arith.addf %2, %4 : vector<8x32xf32>
    %c0_5 = arith.constant 0 : index
    %c0_6 = arith.constant 0 : index
    %6 = vector.load %arg4[%c0_5, %c0_6] : memref<8x32xf32, #tpu.memory_space<vmem>>, vector<8x32xf32>
    tpu.vector_store %arg4[%c0_5, %c0_6], %5 {strides = array<i32>} : memref<8x32xf32, #tpu.memory_space<vmem>>, vector<8x32xf32>,
    return
  }
  func.func @transform_0(%arg0: i32) -> (i32, i32) {
    %c0_i32 = arith.constant 0 : i32
    %c0_i32_0 = arith.constant 0 : i32
    return %arg0, %c0_i32 : i32, i32
  }
  func.func @transform_1(%arg0: i32) -> (i32, i32) {
    %c0_i32 = arith.constant 0 : i32
    %c0_i32_0 = arith.constant 0 : i32
    %c0_i32_1 = arith.constant 0 : i32
    return %c0_i32, %c0_i32_0 : i32, i32
  }
  func.func @transform_2(%arg0: i32) -> (i32, i32) {
    %c0_i32 = arith.constant 0 : i32
    %c0_i32_0 = arith.constant 0 : i32
    %c0_i32_1 = arith.constant 0 : i32
    return %c0_i32, %c0_i32_0 : i32, i32
  }
  func.func @transform_3(%arg0: i32) -> (i32, i32) {
    %c0_i32 = arith.constant 0 : i32
    %c0_i32_0 = arith.constant 0 : i32
    return %arg0, %c0_i32 : i32, i32
  }
}

</mosaic_0001>

<bundles_post_ra>
// kernel: tpu_custom_call.1
= control target key start
LH: loop header
LB: loop body
LE: loop exit
PB: predicated region body
PF: predicated region fallthrough
CT: control target
= control target key end

     0   :  { %8 = vsyncpa [#allocation3], 0  ;;  %s322_s0 = inlined_call_operand.hbm [shape: f32[8,32], index: 0, kind: input, shape index: {}]   ;;  %s323_s1 = inlined_call_operand.hbm [shape: f32[32,32], index: 1, kind: input, shape index: {}]   ;;  %s324_s2 = inlined_call_operand.vmem [shape: f32[1,32], index: 2, kind: input, shape index: {}]   ;;  %s325_s3 = inlined_call_operand.hbm [shape: f32[8,32], index: 3, kind: output, shape index: {}]  }
   0x1   :  { %9 = vsyncpa [#allocation6], 0 }
   0x2   :  { %10 = vsyncpa [#allocation4], 0  ;;  %s248_s12 = smov [#allocation2]   ;;  %s249_s14 = smov [#allocation5]  }
   0x3   :  { %s17_s13 = sshll.u32 %s248_s12, 4  ;;  %s26_s15 = sshll.u32 %s249_s14, 4  ;;  %s18_s13 = int_to_ptr.vmem [resolvable:$true] %s17_s13  ;;  %s276_s15 = int_to_ptr.vmem [resolvable:$true] %s26_s15 }
   0x4   :  { %s176_s18 = scalar_lea.hbm %s322_s0, 128 }
   0x5   :  { %p177_p0 = scmp.ne.s32.totalorder %s322_s0, %s176_s18  ;;  %p180_p1 = scmp.lt.u32.totalorder %s176_s18, %s322_s0 }
   0x7   :  { %p182_p2 = pnand %p180_p1, %p177_p0 }
   0x9   :  { %185 = shalt.err (!%p182_p2)
}
   0xa   :  { %s186_s23 = scalar_lea.vmem %s18_s13, 128  ;;  %p191_p4 = scmp.lt.s32.totalorder %s18_s13, %s18_s13 }
   0xb   :  { %p187_p3 = scmp.ne.s32.totalorder %s18_s13, %s186_s23  ;;  %p192_p5 = scmp.lt.s32.totalorder %s186_s23, %s186_s23 }
   0xd   :  { %p193_p6 = por %p192_p5, %p191_p4 }
   0xf   :  { %p194_p7 = pnand %p193_p6, %p187_p3 }
  0x11   :  { %197 = shalt.err (!%p194_p7)
}
  0x12   :  { %20 = dma.hbm_to_vmem [thread:$0]  %s322_s0, 128, %s18_s13, [#allocation3]  }
  0x13   :  { %s198_s28 = scalar_lea.hbm %s323_s1, 512 }
  0x14   :  { %p199_p8 = scmp.ne.s32.totalorder %s323_s1, %s198_s28  ;;  %p202_p9 = scmp.lt.u32.totalorder %s198_s28, %s323_s1 }
  0x16   :  { %p204_p10 = pnand %p202_p9, %p199_p8 }
  0x18   :  { %207 = shalt.err (!%p204_p10)
}
  0x19   :  { %s208_s6 = scalar_lea.vmem %s276_s15, 512  ;;  %p213_p12 = scmp.lt.s32.totalorder %s276_s15, %s276_s15 }
  0x1a   :  { %p209_p11 = scmp.ne.s32.totalorder %s276_s15, %s208_s6  ;;  %p214_p13 = scmp.lt.s32.totalorder %s208_s6, %s208_s6 }
  0x1c   :  { %p215_p0 = por %p214_p13, %p213_p12 }
  0x1e   :  { %p216_p1 = pnand %p215_p0, %p209_p11 }
  0x20   :  { %219 = shalt.err (!%p216_p1)
}
  0x21   :  { %s250_s0 = smov 128   ;;  %s251_s7 = smov 8  }
  0x22   :  { %32 = dma.hbm_to_vmem [thread:$0]  %s323_s1, 512, %s276_s15, [#allocation6], %s250_s0, %s250_s0, %s251_s7  }
  0x23   :  { %242 = dma.done.wait [#allocation3], 128  }
  0x24   :  { %243 = vsyncadd [#allocation3], 4294967168 }
  0x25   :  { %244 = dma.done.wait [#allocation6], 512  }
  0x26   :  { %245 = vsyncadd [#allocation6], 4294966784  ;;  %v252_v0 = vmov 0.0|0.0   ;;  %vm253_vm0 = vmmov 0   ;;  %v254_v1 = vmov 0.0   ;;  %v42_v2 = vld [vmem:[#allocation5] sm:$0xff] }
  0x27   :  { %162 = vmatprep.subr.bf16.mxu0 %v252_v0  ;;  %159 = vmatprep.mubr.msk.f32.mxu0 %vm253_vm0, %v254_v1  ;;  %v43_v3 = vld [vmem:[#allocation5 + $0x8] sm:$0xff]  ;;  %v44_v4 = vld [vmem:[#allocation5 + $0x10] sm:$0xff]  ;;  %v45_v6 = vld [vmem:[#allocation5 + $0x18] sm:$0xff]  ;;  %vm53_vm1 = vcmask 261120   ;;  %s255_s11 = smov [#allocation7]  }
  0x28   :  { %v163_v5 = vpack.c.bf16 %v43_v3, %v42_v2  ;;  %v166_v7 = vpack.c.bf16 %v45_v6, %v44_v4  ;;  %v41_v8 = vld [vmem:[#allocation2] sm:$0xff]  ;;  %s134_s12 = sshll.u32 %s255_s11, 4  ;;  %s135_s12 = int_to_ptr.vmem [resolvable:$true] %s134_s12 }
  0x29   :  { %v144_v9 = vld [vmem:[%s324_s2] ss:$0 sm:$0xff]  ;;  %s220_s13 = scalar_lea.vmem %s135_s12, 128  ;;  %p225_p3 = scmp.lt.s32.totalorder %s135_s12, %s135_s12 }
  0x2a   :  { %164 = vmatpush3.bf16.msra.mxu0 %v163_v5  ;;  %p221_p2 = scmp.ne.s32.totalorder %s135_s12, %s220_s13  ;;  %p226_p4 = scmp.lt.s32.totalorder %s220_s13, %s220_s13 }
  0x2b   :  { %165 = vmatprep.subr.bf16.mxu0 %v252_v0 }
  0x2c   :  { %p227_p5 = por %p226_p4, %p225_p3 }
  0x2e   :  { %167 = vmatpush3.bf16.msra.mxu0 %v166_v7  ;;  %p228_p6 = pnand %p227_p5, %p221_p2 }
  0x31   :  { %160 = vmatmul.mubr.msk.f32.vlgmr.msra.gmra.mrb[0].mxu0 %vm53_vm1, %v41_v8 }
 0x104   :  { %v123_v10 = vpop.f32.mrb[0].mxu0 }
 0x105   :  { %v124_v11 = vadd.f32 %v144_v9, %v123_v10  ;;  %v161_v12 = vpop.f32.mrb[1].mxu0 }
 0x107   :  { %127 = vst.msk [vmem:[#allocation7] sm:$0xff] %vm53_vm1, %v124_v11 }
 0x108   :  { %231 = shalt.err (!%p228_p6)
}
 0x109   :  { %s232_s16 = scalar_lea.hbm %s325_s3, 128 }
 0x10a   :  { %p233_p7 = scmp.ne.s32.totalorder %s325_s3, %s232_s16  ;;  %p236_p8 = scmp.lt.u32.totalorder %s232_s16, %s325_s3 }
 0x10c   :  { %p238_p9 = pnand %p236_p8, %p233_p7 }
 0x10e   :  { %241 = shalt.err (!%p238_p9)
}
 0x10f   :  { %137 = dma.vmem_to_hbm [thread:$0]  %s135_s12, 128, %s325_s3, [#allocation4]  }
 0x110   :  { %246 = dma.done.wait [#allocation4], 128  }
 0x111   :  { %247 = vsyncadd [#allocation4], 4294967168 }
 0x112   :  { %141 = vsyncpa [#allocation3], 1 }
 0x113   :  { %142 = vsyncpa [#allocation6], 1 }
 0x114   :  { %143 = vsyncpa [#allocation4], 1 }

</bundles_post_ra>
